<compile_context>
chip_gen: v5e
topology: v5e:2x2
jax: 0.10.0
libtpu: 0.0.40
codegen_flags: <defaults>
</compile_context>

<pallas_src>
import functools

import jax
import jax.numpy as jnp
from jax.experimental import pallas as pl
from jax.experimental.pallas import tpu as pltpu


def _round_up(a, b):
    return (a + b - 1) // b * b


def _conv_tap_kernel(xm_ref, xh_ref, w_ref, b_ref, o_ref, *, taps, tp, neg_slope):
    """One (batch element, flat-pixel tile) per grid step.

    xm_ref : (1, Cin, TP)    flat padded-input tile (flat pixels on lanes)
    xh_ref : (1, Cin, HALO)  the HALO flat pixels immediately after the tile
    w_ref  : (Cout, K)       K = KH*KW*Cin, columns ordered (kh, kw, cin)
    b_ref  : (Cout, 1)
    o_ref  : (1, Cout, TP)   stride-1 output over the padded width
    """
    x_full = jnp.concatenate([xm_ref[0], xh_ref[0]], axis=-1)         # (Cin, TP+HALO)
    # In-VMEM im2col: one lane-shifted view per (kh, kw) tap; shifts are static.
    x_col = jnp.concatenate([x_full[:, s:s + tp] for s in taps], axis=0)   # (K, TP)
    acc = jnp.dot(w_ref[...], x_col, preferred_element_type=jnp.float32)   # (Cout, TP)
    acc = acc + b_ref[...]                                             # lane-broadcast bias
    acc = jnp.where(acc >= 0.0, acc, neg_slope * acc)                  # LeakyReLU(0.01)
    o_ref[0] = acc.astype(o_ref.dtype)


def nonorm_conv2d(x_nchw, weight, bias, *, stride, padding, neg_slope=0.01):
    """Forward pass of nonorm_Conv2d (Conv2d + LeakyReLU(0.01)).

    x_nchw : (N, Cin, H, W)        (PyTorch layout)
    weight : (Cout, Cin, KH, KW)   (PyTorch layout)
    bias   : (Cout,)
    returns: (N, Cout, OH, OW)
    """
    N, Cin, H, W = x_nchw.shape
    Cout, Cin_w, KH, KW = weight.shape
    assert Cin == Cin_w
    sh, sw = (stride, stride) if isinstance(stride, int) else tuple(stride)
    ph, pw = (padding, padding) if isinstance(padding, int) else tuple(padding)

    OH = (H + 2 * ph - KH) // sh + 1
    OW = (W + 2 * pw - KW) // sw + 1
    Hp, Wp = H + 2 * ph, W + 2 * pw
    Hs1 = Hp - KH + 1                     # stride-1 output rows (padded-width layout)
    L = Hp * Wp                           # flat padded-image length
    Q = Hs1 * Wp                          # flat stride-1 outputs computed (incl. garbage cols)
    K = KH * KW * Cin
    taps = tuple(kh * Wp + kw for kh in range(KH) for kw in range(KW))

    # Halo: enough flat pixels after each tile to cover the largest tap shift,
    # rounded up to a lane-aligned (128) block.  TP is kept a multiple of HALO
    # so the halo BlockSpec's index_map stays in whole blocks.
    halo = max(128, _round_up(taps[-1], 128))

    itemsize = 4  # f32 path

    # ---- tile sizing: generation-aware VMEM budget + per-step HBM target ----
    try:
        info = pltpu.get_tpu_info()
        vmem_phys = int(getattr(info, "vmem_capacity_bytes", 64 * 1024 * 1024))
    except Exception:                     # no TPU info available: assume v7x's 64 MiB
        vmem_phys = 64 * 1024 * 1024
    vmem_limit = min(int(vmem_phys * 0.70), 96 * 1024 * 1024)

    # Per-flat-pixel VMEM: double-buffered input/output tiles plus the in-kernel
    # (Cin, TP+HALO) concat, (K, TP) column buffer and (Cout, TP) accumulator.
    vmem_per_px = itemsize * (2 * Cin + 2 * Cout + Cin + K + Cout)
    # Fixed VMEM: halo buffers, the (grid-invariant but double-buffered) weight
    # and bias blocks, plus headroom for compiler scratch.
    fixed_vmem = itemsize * (3 * Cin * halo + 2 * Cout * K + 2 * Cout) + (4 << 20)
    tp_vmem = max(halo, (vmem_limit - fixed_vmem) // vmem_per_px)

    # ~2 MiB of HBM traffic per grid step so the ~0.35 us/step overhead stays
    # amortized even at v7x's 3.2 TB/s HBM.
    tp_hbm = (2 << 20) // (itemsize * (Cin + Cout))

    tp = max(halo, _round_up(min(tp_vmem, tp_hbm, Q), halo))
    num_tiles = (Q + tp - 1) // tp
    q_pad = num_tiles * tp
    lf = q_pad + halo                     # flat length handed to the kernel

    # ---- layout glue (single 1x pass over the input; no HBM im2col) --------
    xp = jnp.pad(x_nchw, ((0, 0), (0, 0), (ph, ph), (pw, pw)))        # (N, Cin, Hp, Wp)
    xf = xp.reshape(N, Cin, L)
    xf = jnp.pad(xf, ((0, 0), (0, 0), (0, lf - L)))                   # zero tail for halo

    # Weights -> (Cout, K) with (kh, kw, cin) column order to match x_col.
    w_mat = jnp.transpose(weight, (0, 2, 3, 1)).reshape(Cout, K).astype(jnp.float32)
    b2d = bias.reshape(Cout, 1).astype(jnp.float32)

    kernel = functools.partial(_conv_tap_kernel, taps=taps, tp=tp, neg_slope=neg_slope)

    out_q = pl.pallas_call(
        kernel,
        out_shape=jax.ShapeDtypeStruct((N, Cout, q_pad), x_nchw.dtype),
        grid_spec=pltpu.PrefetchScalarGridSpec(
            num_scalar_prefetch=0,
            grid=(N, num_tiles),
            in_specs=[
                # main tile: flat pixels [t*TP, (t+1)*TP)
                pl.BlockSpec((1, Cin, tp), lambda n, t: (n, 0, t)),
                # halo: flat pixels [(t+1)*TP, (t+1)*TP + HALO) of the same array
                pl.BlockSpec((1, Cin, halo),
                             lambda n, t: (n, 0, (t + 1) * (tp // halo))),
                pl.BlockSpec((Cout, K), lambda n, t: (0, 0)),
                pl.BlockSpec((Cout, 1), lambda n, t: (0, 0)),
            ],
            out_specs=pl.BlockSpec((1, Cout, tp), lambda n, t: (n, 0, t)),
        ),
        compiler_params=pltpu.CompilerParams(
            dimension_semantics=("parallel", "parallel"),
            vmem_limit_bytes=int(vmem_limit),
        ),
    )(xf, xf, w_mat, b2d)

    # Undo the flat-shift layout: keep valid stride-1 rows, drop the garbage
    # columns beyond OW, and subsample for the requested stride.
    out1 = out_q[:, :, :Q].reshape(N, Cout, Hs1, Wp)
    return out1[:, :, ::sh, ::sw][:, :, :OH, :OW]


if __name__ == "__main__":
    # Module config (matches nonorm_Conv2d(cin, cout, kernel_size, stride, padding)).
    cin, cout, ksize = 4, 8, 3
    N, H, W = 2, 16, 16

    key = jax.random.PRNGKey(0)
    kx, kw_, kb = jax.random.split(key, 3)

    x = jax.random.normal(kx, (N, cin, H, W), dtype=jnp.float32)
    fan_in = cin * ksize * ksize
    weight = jax.random.normal(kw_, (cout, cin, ksize, ksize), jnp.float32) / jnp.sqrt(fan_in)
    bias = jax.random.normal(kb, (cout,), jnp.float32) * 0.1

    def reference(x, weight, bias, stride, padding):
        r = jax.lax.conv_general_dilated(
            x, weight, window_strides=(stride, stride),
            padding=((padding, padding), (padding, padding)),
            dimension_numbers=("NCHW", "OIHW", "NCHW"),
        ) + bias.reshape(1, cout, 1, 1)
        return jnp.where(r >= 0.0, r, 0.01 * r)

    # stride=1, padding=1 (the common syncnet config)
    out = nonorm_conv2d(x, weight, bias, stride=1, padding=1)
    out = jax.block_until_ready(out)
    ref = reference(x, weight, bias, 1, 1)
    assert out.shape == (N, cout, H, W)
    assert jnp.allclose(out, ref, rtol=1e-3, atol=1e-3)

    # stride=2, padding=1 (exercise the strided path of the same kernel)
    out2 = nonorm_conv2d(x, weight, bias, stride=2, padding=1)
    out2 = jax.block_until_ready(out2)
    ref2 = reference(x, weight, bias, 2, 1)
    assert out2.shape == ref2.shape
    assert jnp.allclose(out2, ref2, rtol=1e-3, atol=1e-3)

    print("KERNEL_OK")
</pallas_src>

<mosaic_0001>
module attributes {stable_mosaic.version = 11 : i64} {
  func.func @_conv_tap_kernel(%arg0: i32, %arg1: i32, %arg2: memref<1x4x384xf32, #tpu.memory_space<vmem>>, %arg3: memref<1x4x128xf32, #tpu.memory_space<vmem>>, %arg4: memref<8x36xf32, #tpu.memory_space<vmem>>, %arg5: memref<8x1xf32, #tpu.memory_space<vmem>>, %arg6: memref<1x8x384xf32, #tpu.memory_space<vmem>>) attributes {dimension_semantics = [#tpu.dimension_semantics<parallel>, #tpu.dimension_semantics<parallel>], iteration_bounds = array<i64: 2, 1>, scalar_prefetch = 0 : i64, scratch_operands = 0 : i64, tpu.core_type = #tpu.core_type<tc>, window_params = [{transform_indices = @transform_0, window_bounds = array<i64: 1, 4, 384>}, {transform_indices = @transform_1, window_bounds = array<i64: 1, 4, 128>}, {pipeline_mode = #tpu.pipeline_mode<synchronous>, transform_indices = @transform_2, window_bounds = array<i64: 8, 36>}, {pipeline_mode = #tpu.pipeline_mode<synchronous>, transform_indices = @transform_3, window_bounds = array<i64: 8, 1>}, {transform_indices = @transform_4, window_bounds = array<i64: 1, 8, 384>}]} {
    %c0 = arith.constant 0 : index
    %c0_0 = arith.constant 0 : index
    %c0_1 = arith.constant 0 : index
    %0 = vector.load %arg2[%c0, %c0_0, %c0_1] : memref<1x4x384xf32, #tpu.memory_space<vmem>>, vector<1x4x384xf32>
    %1 = vector.shape_cast %0 : vector<1x4x384xf32> to vector<4x384xf32>
    %c0_2 = arith.constant 0 : index
    %c0_3 = arith.constant 0 : index
    %c0_4 = arith.constant 0 : index
    %2 = vector.load %arg3[%c0_2, %c0_3, %c0_4] : memref<1x4x128xf32, #tpu.memory_space<vmem>>, vector<1x4x128xf32>
    %3 = vector.shape_cast %2 : vector<1x4x128xf32> to vector<4x128xf32>
    %4 = tpu.concatenate %1, %3 in 1 : vector<4x384xf32>, vector<4x128xf32> -> vector<4x512xf32>
    %5 = vector.extract_strided_slice %4 {offsets = [0, 0], sizes = [4, 384], strides = [1, 1]} : vector<4x512xf32> to vector<4x384xf32>
    %6 = vector.extract_strided_slice %4 {offsets = [0, 1], sizes = [4, 384], strides = [1, 1]} : vector<4x512xf32> to vector<4x384xf32>
    %7 = vector.extract_strided_slice %4 {offsets = [0, 2], sizes = [4, 384], strides = [1, 1]} : vector<4x512xf32> to vector<4x384xf32>
    %8 = vector.extract_strided_slice %4 {offsets = [0, 18], sizes = [4, 384], strides = [1, 1]} : vector<4x512xf32> to vector<4x384xf32>
    %9 = vector.extract_strided_slice %4 {offsets = [0, 19], sizes = [4, 384], strides = [1, 1]} : vector<4x512xf32> to vector<4x384xf32>
    %10 = vector.extract_strided_slice %4 {offsets = [0, 20], sizes = [4, 384], strides = [1, 1]} : vector<4x512xf32> to vector<4x384xf32>
    %11 = vector.extract_strided_slice %4 {offsets = [0, 36], sizes = [4, 384], strides = [1, 1]} : vector<4x512xf32> to vector<4x384xf32>
    %12 = vector.extract_strided_slice %4 {offsets = [0, 37], sizes = [4, 384], strides = [1, 1]} : vector<4x512xf32> to vector<4x384xf32>
    %13 = vector.extract_strided_slice %4 {offsets = [0, 38], sizes = [4, 384], strides = [1, 1]} : vector<4x512xf32> to vector<4x384xf32>
    %14 = tpu.concatenate %5, %6, %7, %8, %9, %10, %11, %12, %13 in 0 : vector<4x384xf32>, vector<4x384xf32>, vector<4x384xf32>, vector<4x384xf32>, vector<4x384xf32>, vector<4x384xf32>, vector<4x384xf32>, vector<4x384xf32>, vector<4x384xf32> -> vector<36x384xf32>
    %c0_5 = arith.constant 0 : index
    %c0_6 = arith.constant 0 : index
    %15 = vector.load %arg4[%c0_5, %c0_6] : memref<8x36xf32, #tpu.memory_space<vmem>>, vector<8x36xf32>
    %cst = arith.constant dense<0.000000e+00> : vector<8x384xf32>
    %16 = tpu.matmul %15, %14, %cst {dimension_numbers = #tpu.dot_dimension_numbers<[1], [0], [0], [1], [0, 0, 1, 1], [], []>} : vector<8x36xf32>, vector<36x384xf32>, vector<8x384xf32> -> vector<8x384xf32>
    %c0_7 = arith.constant 0 : index
    %c0_8 = arith.constant 0 : index
    %17 = vector.load %arg5[%c0_7, %c0_8] : memref<8x1xf32, #tpu.memory_space<vmem>>, vector<8x1xf32>
    %18 = vector.broadcast %17 : vector<8x1xf32> to vector<8x384xf32>
    %19 = arith.addf %16, %18 : vector<8x384xf32>
    %cst_9 = arith.constant 0.000000e+00 : f32
    %20 = vector.broadcast %cst_9 : f32 to vector<8x384xf32>
    %21 = arith.cmpf oge, %19, %20 : vector<8x384xf32>
    %cst_10 = arith.constant 0.00999999977 : f32
    %22 = vector.broadcast %cst_10 : f32 to vector<8x384xf32>
    %23 = arith.mulf %22, %19 : vector<8x384xf32>
    %24 = arith.select %21, %19, %23 : vector<8x384xi1>, vector<8x384xf32>
    %c0_11 = arith.constant 0 : index
    %c0_12 = arith.constant 0 : index
    %c0_13 = arith.constant 0 : index
    %25 = vector.load %arg6[%c0_11, %c0_12, %c0_13] : memref<1x8x384xf32, #tpu.memory_space<vmem>>, vector<1x8x384xf32>
    %26 = vector.shape_cast %25 : vector<1x8x384xf32> to vector<8x384xf32>
    %27 = vector.shape_cast %24 : vector<8x384xf32> to vector<1x8x384xf32>
    tpu.vector_store %arg6[%c0_11, %c0_12, %c0_13], %27 {strides = array<i32>} : memref<1x8x384xf32, #tpu.memory_space<vmem>>, vector<1x8x384xf32>,
    return
  }
  func.func @transform_0(%arg0: i32, %arg1: i32) -> (i32, i32, i32) {
    %c0_i32 = arith.constant 0 : i32
    %c0_i32_0 = arith.constant 0 : i32
    return %arg0, %c0_i32, %arg1 : i32, i32, i32
  }
  func.func @transform_1(%arg0: i32, %arg1: i32) -> (i32, i32, i32) {
    %c1_i32 = arith.constant 1 : i32
    %0 = arith.addi %arg1, %c1_i32 : i32
    %c3_i32 = arith.constant 3 : i32
    %1 = arith.muli %0, %c3_i32 : i32
    %c0_i32 = arith.constant 0 : i32
    %c0_i32_0 = arith.constant 0 : i32
    return %arg0, %c0_i32, %1 : i32, i32, i32
  }
  func.func @transform_2(%arg0: i32, %arg1: i32) -> (i32, i32) {
    %c0_i32 = arith.constant 0 : i32
    %c0_i32_0 = arith.constant 0 : i32
    %c0_i32_1 = arith.constant 0 : i32
    return %c0_i32, %c0_i32_0 : i32, i32
  }
  func.func @transform_3(%arg0: i32, %arg1: i32) -> (i32, i32) {
    %c0_i32 = arith.constant 0 : i32
    %c0_i32_0 = arith.constant 0 : i32
    %c0_i32_1 = arith.constant 0 : i32
    return %c0_i32, %c0_i32_0 : i32, i32
  }
  func.func @transform_4(%arg0: i32, %arg1: i32) -> (i32, i32, i32) {
    %c0_i32 = arith.constant 0 : i32
    %c0_i32_0 = arith.constant 0 : i32
    return %arg0, %c0_i32, %arg1 : i32, i32, i32
  }
}

</mosaic_0001>

<bundles_post_ra>
// kernel: tpu_custom_call.1
= control target key start
LH: loop header
LB: loop body
LE: loop exit
PB: predicated region body
PF: predicated region fallthrough
CT: control target
= control target key end

     0   :  { %s1253_s0 = inlined_call_operand.hbm [shape: f32[2,4,512], index: 0, kind: input, shape index: {}]   ;;  %s1254_s1 = inlined_call_operand.hbm [shape: f32[2,4,512], index: 1, kind: input, shape index: {}]   ;;  %s1255_s2 = inlined_call_operand.vmem [shape: f32[8,36], index: 2, kind: input, shape index: {}]   ;;  %s1256_s3 = inlined_call_operand.vmem [shape: f32[8,1], index: 3, kind: input, shape index: {}]   ;;  %s1257_s4 = inlined_call_operand.hbm [shape: f32[2,8,384], index: 4, kind: output, shape index: {}]  }
   0x1   :  { %1258 = sst [smem:[#allocation11_spill]] %s1253_s0 }
   0x2   :  { %9 = vsyncpa [#allocation3], 0 }
   0x3   :  { %11 = vsyncpa [#allocation3 + $0x1], 0 }
   0x4   :  { %12 = vsyncpa [#allocation6], 0 }
   0x5   :  { %14 = vsyncpa [#allocation6 + $0x1], 0 }
   0x6   :  { %15 = vsyncpa [#allocation4], 0 }
   0x7   :  { %17 = vsyncpa [#allocation4 + $0x1], 0  ;;  %s1021_s15 = smov 0   ;;  %s1023_s16 = smov 0  }
   0x8   :  { %s1025_s17 = smov 0   ;;  %s1027_s18 = smov 0  }
   0x9   :  { %s1029_s19 = smov 0   ;;  %s1031_s20 = smov 0  }
   0xa LB: > { %s666_s21 = sadd.s32 4294967295, %s985_s20   ;;  %s667_s22 = sadd.s32 4294967294, %s985_s20   ;;  %s985_s20 = sphi %s1031_s20, %s23_s20   ;;  %s981_s19 = sphi %s1029_s19, %s1269_s19   ;;  %s977_s18 = sphi %s1027_s18, %s1268_s18   ;;  %s973_s17 = sphi %s1025_s17, %s1267_s17   ;;  %s969_s16 = sphi %s1023_s16, %s1266_s16   ;;  %s965_s15 = sphi %s1021_s15, %s1265_s15  }
   0xb   : > { %s35_s23 = sadd.s32 1, %s981_s19  ;;  %s44_s24 = sadd.s32 1, %s973_s17 }
   0xc   : > { %p37_p0 = scmp.ge.s32.totalorder %s35_s23, 2  ;;  %p51_p1 = scmp.ne.s32.totalorder %s973_s17, %s969_s16 }
   0xd   : > { %p52_p2 = scmp.eq.s32.totalorder %s985_s20, 0  ;;  %p57_p3 = scmp.ne.s32.totalorder %s969_s16, %s965_s15 }
   0xe   : > { %s1271_s23 = smov (%p37_p0, %s35_s23), 0  ;;  %p58_p5 = scmp.eq.s32.totalorder %s666_s21, 0 }
   0xf   : > { %p1062_p4 = por %p52_p2, %p51_p1  ;;  %s39_s26 = ssub.s32 %s981_s19, %s1271_s23 }
  0x10   : > { %p157_p6 = scmp.eq.s32.totalorder %s666_s21, 1  ;;  %p42_p7 = scmp.eq.s32.totalorder %s39_s26, 0 }
  0x11   : > { %p1068_p8 = por %p58_p5, %p57_p3  ;;  %p163_p10 = scmp.eq.s32.totalorder %s667_s22, 1 }
  0x12   : > { %p1072_p9 = por %p157_p6, %p51_p1  ;;  %p669_p12 = scmp.ge.s32.totalorder %s985_s20, 2 }
  0x13   : > { %s1077_s29 = scalar_select %p42_p7, %s973_s17, %s44_s24  }
  0x14   : > { %p1079_p11 = por %p163_p10, %p57_p3  ;;  %p709_p13 = scmp.lt.s32.totalorder %s985_s20, 2 }
  0x15   : > { %s189_s5 = sand.u32 1, %s973_s17   ;;  %s686_s7 = sshll.u32 %s981_s19, 4 }
  0x16   : > { %s688_s6 = smul.u32 12, %s189_s5  ;;  %p1089_p0 = pnand %p709_p13, %p1062_p4 }
  0x17   : > { %s1264_s0 = sld [smem:[#allocation11_spill]]  ;;  %p675_p1 = scmp.ge.s32.totalorder %s985_s20, 1 }
  0x18   : > { %s193_s13 = scalar_lea.vmem [#allocation2], %s688_s6  ;;  %s190_s21 = scalar_lea.sflag [#allocation3], %s189_s5 }
  0x19   : > { %s211_s14 = sshll.u32 %s193_s13, 4  ;;  %p239_p2 = scmp.lt.s32.totalorder %s985_s20, 3  ;;  %s212_s14 = int_to_ptr.vmem [resolvable:$true] %s211_s14 }
  0x1a   : > { %s672_s22 = sshll.u32 %s189_s5, 2  ;;  %s597_s26 = scalar_lea.hbm %s1254_s1, %s686_s7 }
  0x1b   : > { %p240_p3 = pnand %p675_p1, %p239_p2  ;;  %s598_s9 = scalar_lea.hbm %s597_s26, 12 }
  0x1c   : > { %s222_s10 = scalar_lea.vmem [#allocation5], %s672_s22  ;;  %s219_s6 = scalar_lea.sflag [#allocation6], %s189_s5 }
  0x1d   : > { %s206_s11 = scalar_lea.hbm %s1264_s0, %s686_s7  ;;  %s234_s0 = sshll.u32 %s222_s10, 4  ;;  %s235_s0 = int_to_ptr.vmem [resolvable:$true] %s234_s0 }
  0x1e   : > { %s209_s12 = sshll.u32 %s206_s11, 4  ;;  %s232_s11 = sshll.u32 %s598_s9, 4  ;;  %s210_s12 = int_to_ptr.hbm [resolvable:$true] %s209_s12  ;;  %s233_s11 = int_to_ptr.hbm [resolvable:$true] %s232_s11 }
  0x1f   : > { %701 = dma.hbm_to_vmem [thread:$0]  (!%p1089_p0), %s210_s12, 192, %s212_s14, %s190_s21  }
  0x20   : > { %704 = dma.hbm_to_vmem [thread:$0]  (!%p1089_p0), %s233_s11, 64, %s235_s0, %s219_s6  }
  0x21   : > { %243 = sbr.rel (%p240_p3) target bundleno = 350 (0x15e), region = 36  ;;  %s1106_s12 = sand.u32 (!%p240_p3), 1, %s969_s16  }
  0x22   : > { %s689_s13 = smul.u32 (!%p240_p3), 12, %s1106_s12  ;;  %s246_s14 = scalar_lea.sflag (!%p240_p3), [#allocation3], %s1106_s12 }
  0x24   : > { %s249_s7 = scalar_lea.vmem (!%p240_p3), [#allocation2], %s689_s13 }
  0x26   : > { %952 = dma.done.wait (%p1068_p8), %s246_s14, 192  }
  0x27   : > { %954 = vsyncadd (%p1068_p8), %s246_s14, 4294967104  ;;  %s676_s5 = sshll.u32 %s1106_s12, 2  ;;  %s256_s0 = scalar_lea.sflag [#allocation6], %s1106_s12 }
  0x28   : > { %s259_s8 = scalar_lea.vmem [#allocation5], %s676_s5 }
  0x29   : > { %956 = dma.done.wait (%p1068_p8), %s256_s0, 64  }
  0x2a   : > { %958 = vsyncadd (%p1068_p8), %s256_s0, 4294967232  ;;  %v300_v0 = vld [vmem:[%s259_s8] sm:$0xf]  ;;  %v299_v1 = vld [vmem:[%s249_s7 + $0x8] sm:$0xf]  ;;  %s987_s21 = smov 90  }
  0x2b   : > { %v298_v2 = vld [vmem:[%s249_s7] sm:$0xff]  ;;  %428 = vrot.lane.b32.xlu0 %v300_v0, %s987_s21  ;;  %305 = vst [vmem:[#allocation1 + $0x10] ss:$2 sm:$0xff] %v299_v1  ;;  %s988_s22 = smov 109   ;;  %s989_s24 = smov 92   ;;  %v316_v6 = vrot.slane %v300_v0, 4 }
  0x2c   : > { %303 = vst [vmem:[#allocation1] ss:$2 sm:$0xff] %v298_v2  ;;  %s990_s27 = smov 126   ;;  %s991_s25 = smov 91   ;;  %vm430_vm0 = vcmask 736256   ;;  %vm434_vm1 = vcmask 1043456  }
  0x2d   : > { %s992_s26 = smov 110   ;;  %s993_s9 = smov 108   ;;  %vm400_vm2 = vcmask 752640   ;;  %vm415_vm3 = vcmask 744448   ;;  %vm370_vm4 = vcmask 891904   ;;  %vm385_vm5 = vcmask 883712  }
  0x2e   : > { %s994_s10 = smov 127   ;;  %vm340_vm6 = vcmask 1031168   ;;  %vm355_vm7 = vcmask 900096   ;;  %v448_v43 = vld [vmem:[%s1256_s3] sm:$0xff]  ;;  %v995_v48 = vmov 0   ;;  %vm325_vm8 = vcmask 1039360  }
  0x2f   : > { %838 = vset.pattern.permute.xlu0 %v995_v48  ;;  %vm454_vm9 = vcmask 293888   ;;  %s690_s7 = smul.u32 24, %s1106_s12  ;;  %s919_s11 = scalar_lea.hbm %s1257_s4, 48 }
  0x30   : > { %s691_s0 = smul.u32 24, %s977_s18  ;;  %s537_s18 = scalar_lea.sflag [#allocation4], %s1106_s12 }
  0x31   : > { %s289_s5 = scalar_lea.vmem [#allocation7], %s690_s7 }
  0x32   : > { %v1120_v3 = vld.sshfl [vmem:[#allocation1 + $0x10] sm:$0xff pattern:$0x75316420] }
  0x33   : > { %426 = vrot.lane.b32.xlu0 %v1120_v3, %s987_s21  ;;  %v773_v4 = vpack.i.bf16 %v300_v0, %v1120_v3  ;;  %v315_v5 = vrot.slane %v1120_v3, 4  ;;  %v1125_v8 = vld.sshfl [vmem:[#allocation1] sm:$0xff pattern:$0x75316420] }
  0x34   : > { %v1128_v9 = vld.sshfl [vmem:[#allocation1 + $0x8] sm:$0xff pattern:$0x75316420]  ;;  %v313_v10 = vrot.slane %v1125_v8, 4 }
  0x35   : > { %774 = vrot.lane.b32.xlu2 %v773_v4, %s988_s22  ;;  %769 = vrot.lane.b32.xlu1 %v773_v4, %s989_s24  ;;  %v783_v7 = vpack.i.bf16 %v316_v6, %v315_v5  ;;  %v314_v11 = vrot.slane %v1128_v9, 4  ;;  %v803_v13 = vpack.i.bf16 %v1128_v9, %v1125_v8 }
  0x37   : > { %v808_v12 = vpack.i.bf16 %v314_v11, %v313_v10 }
  0x3b   : > { %779 = vrot.lane.b32.xlu0 %v773_v4, %s990_s27  ;;  %v447_v4 = vld [vmem:[%s1255_s2] sm:$0xff] }
  0x3d   : > { %784 = vrot.lane.b32.xlu1 %v783_v7, %s991_s25  ;;  %422 = vrot.lane.b32.xlu2 %v1125_v8, %s987_s21 }
  0x43   : > { %424 = vrot.lane.b32.xlu0 %v1128_v9, %s987_s21 }
  0x45   : > { %794 = vrot.lane.b32.xlu1 %v783_v7, %s992_s26  ;;  %789 = vrot.lane.b32.xlu2 %v783_v7, %s993_s9 }
  0x4b   : > { %809 = vrot.lane.b32.xlu0 %v808_v12, %s991_s25 }
  0x4d   : > { %799 = vrot.lane.b32.xlu1 %v783_v7, %s994_s10  ;;  %804 = vrot.lane.b32.xlu2 %v803_v13, %s989_s24  ;;  %s552_s24 = sshll.u32 %s289_s5, 4  ;;  %s553_s24 = int_to_ptr.vmem [resolvable:$true] %s552_s24 }
  0x53   : > { %824 = vrot.lane.b32.xlu0 %v803_v13, %s990_s27 }
  0x55   : > { %814 = vrot.lane.b32.xlu1 %v803_v13, %s988_s22  ;;  %819 = vrot.lane.b32.xlu2 %v808_v12, %s993_s9  ;;  %s550_s22 = scalar_lea.hbm %s1257_s4, %s691_s0 }
  0x56   : > { %s554_s27 = sshll.u32 %s550_s22, 4  ;;  %s555_s27 = int_to_ptr.hbm [resolvable:$true] %s554_s27 }
  0x57   : > { %s913_s25 = sshra.s32 %s555_s27, 4  ;;  %s914_s25 = int_to_ptr.hbm [resolvable:$true] %s913_s25 }
  0x58   : > { %p920_p7 = scmp.lt.s32.totalorder %s914_s25, %s1257_s4 }
  0x5b   : > { %451 = vperm.xlu0 %838, %v448_v43  }
  0x5d   : > { %829 = vrot.lane.b32.xlu1 %v808_v12, %s992_s26  ;;  %834 = vrot.lane.b32.xlu2 %v808_v12, %s994_s10  ;;  %s915_s26 = scalar_lea.hbm %s914_s25, 24 }
  0x5e   : > { %p916_p4 = scmp.ne.s32.totalorder %s914_s25, %s915_s26  ;;  %p921_p8 = scmp.lt.s32.totalorder %s919_s11, %s915_s26 }
  0x60   : > { %p917_p5 = pnand %p916_p4, %p1072_p9  ;;  %p922_p10 = por %p921_p8, %p920_p7 }
  0x62   : > { %p918_p6 = pneg %p917_p5 }
  0x64   : > { %p923_p13 = pnand %p922_p10, %p918_p6 }
  0x8f   : > { %v1135_v14 = vpop.permute.xlu2 %774 }
  0x90   : > { %v777_v20 = vunpack.i.h.bf16 %v1135_v14  ;;  %v776_v21 = vunpack.i.l.bf16 %v1135_v14 }
  0x92   : > { %v373_v33 = vsel %vm370_vm4, %v776_v21, %v777_v20 }
  0x97   : > { %v423_v16 = vpop.permute.xlu2 %422 }
  0x9d   : > { %v429_v15 = vpop.permute.xlu0 %428 }
  0x9f   : > { %v1141_v22 = vpop.permute.xlu2 %789 }
  0xa0   : > { %v792_v24 = vunpack.i.h.bf16 %v1141_v22  ;;  %v791_v25 = vunpack.i.l.bf16 %v1141_v22 }
  0xa2   : > { %v388_v34 = vsel %vm385_vm5, %v791_v25, %v792_v24 }
  0xa3   : > { %v443_v39 = vsel %vm434_vm1, %v373_v33, %v388_v34 }
  0xa5   : > { %v427_v17 = vpop.permute.xlu0 %426 }
  0xa6   : > { %v433_v18 = vsel %vm430_vm0, %v427_v17, %v429_v15 }
  0xa7   : > { %v770_v19 = vpop.permute.xlu1 %769  ;;  %681 = vmatpush.msk.msra.mxu2 %vm434_vm1, %v433_v18  ;;  %v805_v44 = vpop.permute.xlu2 %804 }
  0xa8   : > { %v772_v26 = vunpack.i.h.bf16 %v770_v19  ;;  %v771_v27 = vunpack.i.l.bf16 %v770_v19  ;;  %v806_v49 = vunpack.i.l.bf16 %v805_v44  ;;  %v807_v51 = vunpack.i.h.bf16 %v805_v44 }
  0xaa   : > { %v403_v31 = vsel %vm400_vm2, %v771_v27, %v772_v26  ;;  %v401_v56 = vsel %vm400_vm2, %v806_v49, %v807_v51  ;;  %v402_v58 = vsel %vm400_vm2, %v807_v51, %v771_v27 }
  0xad   : > { %v1143_v23 = vpop.permute.xlu0 %779 }
  0xae   : > { %v782_v36 = vunpack.i.h.bf16 %v1143_v23  ;;  %v781_v37 = vunpack.i.l.bf16 %v1143_v23 }
  0xaf   : > { %v785_v28 = vpop.permute.xlu1 %784  ;;  %v820_v63 = vpop.permute.xlu2 %819 }
  0xb0   : > { %v787_v29 = vunpack.i.h.bf16 %v785_v28  ;;  %v786_v30 = vunpack.i.l.bf16 %v785_v28  ;;  %v343_v47 = vsel %vm340_vm6, %v781_v37, %v782_v36  ;;  %v821_v6 = vunpack.i.l.bf16 %v820_v63 }
  0xb1   : > { %v822_v7 = vunpack.i.h.bf16 %v820_v63 }
  0xb2   : > { %v418_v32 = vsel %vm415_vm3, %v786_v30, %v787_v29 }
  0xb3   : > { %v446_v35 = vsel %vm434_vm1, %v403_v31, %v418_v32  ;;  %v386_v13 = vsel %vm385_vm5, %v821_v6, %v822_v7 }
  0xb4   : > { %516 = vmatpush.msra.mxu2 %v446_v35 }
  0xb5   : > { %v425_v38 = vpop.permute.xlu0 %424 }
  0xb6   : > { %517 = vmatpush.msra.mxu2 %v443_v39  ;;  %v431_v40 = vsel %vm430_vm0, %v423_v16, %v425_v38  ;;  %v432_v41 = vsel %vm430_vm0, %v425_v38, %v427_v17 }
  0xb7   : > { %v1161_v42 = vpop.permute.xlu1 %794  ;;  %677 = vmatpush.msk.msra.mxu0 %vm434_vm1, %v431_v40  ;;  %679 = vmatpush.msk.msra.mxu1 %vm434_vm1, %v432_v41  ;;  %v835_v17 = vpop.permute.xlu2 %834 }
  0xb8   : > { %v797_v45 = vunpack.i.h.bf16 %v1161_v42  ;;  %v796_v46 = vunpack.i.l.bf16 %v1161_v42  ;;  %v836_v24 = vunpack.i.l.bf16 %v835_v17  ;;  %v837_v27 = vunpack.i.h.bf16 %v835_v17 }
  0xba   : > { %v358_v50 = vsel %vm355_vm7, %v796_v46, %v797_v45  ;;  %v326_v22 = vsel %vm325_vm8, %v836_v24, %v837_v27 }
  0xbb   : > { %v440_v52 = vsel %vm434_vm1, %v343_v47, %v358_v50  ;;  %v435_v36 = vsel %vm434_vm1, %v1125_v8, %v326_v22 }
  0xbc   : > { %518 = vmatpush.msra.mxu2 %v440_v52 }
  0xbd   : > { %v810_v53 = vpop.permute.xlu0 %809 }
  0xbe   : > { %v812_v54 = vunpack.i.h.bf16 %v810_v53  ;;  %v811_v55 = vunpack.i.l.bf16 %v810_v53 }
  0xbf   : > { %v800_v57 = vpop.permute.xlu1 %799 }
  0xc0   : > { %v802_v59 = vunpack.i.h.bf16 %v800_v57  ;;  %v801_v60 = vunpack.i.l.bf16 %v800_v57  ;;  %v417_v61 = vsel %vm415_vm3, %v812_v54, %v786_v30  ;;  %v416_v62 = vsel %vm415_vm3, %v811_v55, %v812_v54 }
  0xc1   : > { %v445_v0 = vsel %vm434_vm1, %v402_v58, %v417_v61  ;;  %v444_v1 = vsel %vm434_vm1, %v401_v56, %v416_v62 }
  0xc2   : > { %496 = vmatpush.msra.mxu1 %v445_v0  ;;  %v328_v2 = vsel %vm325_vm8, %v801_v60, %v802_v59  ;;  %476 = vmatpush.msra.mxu0 %v444_v1  ;;  %v327_v33 = vsel %vm325_vm8, %v837_v27, %v801_v60 }
  0xc3   : > { %v437_v5 = vsel %vm434_vm1, %v1120_v3, %v328_v2  ;;  %v387_v3 = vsel %vm385_vm5, %v822_v7, %v791_v25  ;;  %v436_v38 = vsel %vm434_vm1, %v1128_v9, %v327_v33 }
  0xc4   : > { %519 = vmatpush.msra.mxu2 %v437_v5 }
  0xc5   : > { %682 = vmatmul.msk.f32.vlgmr.msra.gmra.mxu2 %vm454_vm9, %v447_v4  ;;  %v825_v18 = vpop.permute.xlu0 %824 }
  0xc6   : > { %v826_v26 = vunpack.i.l.bf16 %v825_v18  ;;  %v827_v28 = vunpack.i.h.bf16 %v825_v18 }
  0xc7   : > { %v815_v10 = vpop.permute.xlu1 %814 }
  0xc8   : > { %v817_v11 = vunpack.i.h.bf16 %v815_v10  ;;  %v816_v12 = vunpack.i.l.bf16 %v815_v10  ;;  %v342_v31 = vsel %vm340_vm6, %v827_v28, %v781_v37 }
  0xca   : > { %v371_v15 = vsel %vm370_vm4, %v816_v12, %v817_v11  ;;  %v372_v16 = vsel %vm370_vm4, %v817_v11, %v776_v21  ;;  %v341_v21 = vsel %vm340_vm6, %v826_v26, %v827_v28 }
  0xcb   : > { %v441_v19 = vsel %vm434_vm1, %v371_v15, %v386_v13  ;;  %v442_v20 = vsel %vm434_vm1, %v372_v16, %v387_v3 }
  0xcc   : > { %477 = vmatpush.msra.mxu0 %v441_v19  ;;  %497 = vmatpush.msra.mxu1 %v442_v20 }
  0xcd   : > { %v452_v23 = vpop.permute.xlu0 %451 }
  0xcf   : > { %v830_v29 = vpop.permute.xlu1 %829 }
  0xd0   : > { %v832_v14 = vunpack.i.h.bf16 %v830_v29  ;;  %v831_v30 = vunpack.i.l.bf16 %v830_v29 }
  0xd2   : > { %v356_v25 = vsel %vm355_vm7, %v831_v30, %v832_v14  ;;  %v357_v32 = vsel %vm355_vm7, %v832_v14, %v796_v46 }
  0xd3   : > { %v438_v34 = vsel %vm434_vm1, %v341_v21, %v356_v25  ;;  %v439_v35 = vsel %vm434_vm1, %v342_v31, %v357_v32 }
  0xd4   : > { %478 = vmatpush.msra.mxu0 %v438_v34  ;;  %498 = vmatpush.msra.mxu1 %v439_v35 }
  0xd6   : > { %479 = vmatpush.msra.mxu0 %v435_v36  ;;  %499 = vmatpush.msra.mxu1 %v436_v38 }
  0xd7   : > { %678 = vmatmul.msk.f32.vlgmr.msra.gmra.mxu0 %vm454_vm9, %v447_v4  ;;  %680 = vmatmul.msk.f32.vlgmr.msra.gmra.mxu1 %vm454_vm9, %v447_v4 }
 0x148   : > { %v521_v37 = vpop.f32.mrf.mxu2 }
 0x149   : > { %v522_v39 = vadd.f32 %v521_v37, %v452_v23 }
 0x14b   : > { %vm526_vm10 = vcmp.ge.f32.partialorder %v522_v39, 0.0  ;;  %v529_v40 = vmul.f32 0.01, %v522_v39 }
 0x14d   : > { %v532_v41 = vsel %vm526_vm10, %v522_v39, %v529_v40 }
 0x14e   : > { %535 = vst [vmem:[%s289_s5 + $0x10] sm:$0xff] %v532_v41 }
 0x154   : > { %v481_v8 = vpop.f32.mrf.mxu0  ;;  %v501_v9 = vpop.f32.mrf.mxu1 }
 0x155   : > { %v482_v42 = vadd.f32 %v481_v8, %v452_v23  ;;  %v502_v43 = vadd.f32 %v501_v9, %v452_v23 }
 0x157   : > { %vm524_vm11 = vcmp.ge.f32.partialorder %v482_v42, 0.0  ;;  %v527_v44 = vmul.f32 0.01, %v482_v42  ;;  %vm525_vm12 = vcmp.ge.f32.partialorder %v502_v43, 0.0  ;;  %v528_v45 = vmul.f32 0.01, %v502_v43 }
 0x159   : > { %v530_v46 = vsel %vm524_vm11, %v482_v42, %v527_v44  ;;  %v531_v47 = vsel %vm525_vm12, %v502_v43, %v528_v45 }
 0x15a   : > { %533 = vst [vmem:[%s289_s5] sm:$0xff] %v530_v46 }
 0x15b   : > { %534 = vst [vmem:[%s289_s5 + $0x8] sm:$0xff] %v531_v47 }
 0x15c   : > { %926 = shalt.err (!%p923_p13)
}
 0x15d   : > { %696 = dma.vmem_to_hbm [thread:$0]  (%p1072_p9), %s553_s24, 384, %s555_s27, %s537_s18  }
 0x15e PF: > { %s566_s12 = sand.u32 1, %s965_s15   ;;  %p706_p0 = pnand %p669_p12, %p1079_p11 }
 0x15f   : > { %s567_s14 = scalar_lea.sflag [#allocation4], %s566_s12 }
 0x160   : > { %p707_p1 = pneg %p706_p0 }
 0x162   : > { %960 = dma.done.wait (%p707_p1), %s567_s14, 384  }
 0x163   : > { %962 = vsyncadd (%p707_p1), %s567_s14, 4294966912  ;;  %s23_s20 = sadd.s32 1, %s985_s20   ;;  %s1265_s15 = smov %s969_s16 }
 0x164   : > { %p20_p2 = scmp.ge.s32.totalorder %s23_s20, 4   ;;  %s1266_s16 = smov %s973_s17 }
 0x165   : > { %s1267_s17 = smov %s1077_s29  ;;  %s1268_s18 = smov %s981_s19 }
 0x166   : > { %s1269_s19 = smov %s1271_s23  ;;  %22 = sbr.rel (!%p20_p2) target bundleno = 10 (0xa), region = 95 }
 0x16b   :  { %573 = vsyncpa [#allocation3], 1 }
 0x16c   :  { %575 = vsyncpa [#allocation3 + $0x1], 1 }
 0x16d   :  { %576 = vsyncpa [#allocation6], 1 }
 0x16e   :  { %578 = vsyncpa [#allocation6 + $0x1], 1 }
 0x16f   :  { %579 = vsyncpa [#allocation4], 1 }
 0x170   :  { %581 = vsyncpa [#allocation4 + $0x1], 1 }

</bundles_post_ra>
